<compile_context>
chip_gen: v7x
topology: tpu7x:2x2x1
jax: 0.10.0
libtpu: 0.0.40
codegen_flags: <defaults>
</compile_context>

<pallas_src>
import jax
import jax.numpy as jnp
from jax import lax
from jax.experimental import pallas as pl
from jax.experimental.pallas import tpu as pltpu


_COMPILER_PARAMS = pltpu.CompilerParams(
    dimension_semantics=("parallel",),       # batch axis -> both TensorCores on v7x
    vmem_limit_bytes=48 * 1024 * 1024,       # above default scoped 16/32 MiB, below v7x 64 MiB
)


# ----------------------------------------------------------------------------
# In-kernel helpers (traced inside the pallas kernels)
# ----------------------------------------------------------------------------
def _shift_rows(h, d, T):
    """y[t] = h[t + d] if 0 <= t + d < T else 0  (d is a static Python int)."""
    if d == 0:
        return h
    y = pltpu.roll(h, (-d) % T, 0)           # sublane rotation (XLU), non-negative shift
    t = lax.broadcasted_iota(jnp.int32, h.shape, 0)
    ok = jnp.logical_and(t + d >= 0, t + d < T)
    return jnp.where(ok, y, 0.0)


def _im2col(h, k, pad, T):
    """(T, Cin) -> (T, k*Cin): k shifted copies concatenated along lanes."""
    if k == 1:
        return h
    return jnp.concatenate([_shift_rows(h, j - pad, T) for j in range(k)], axis=-1)


def _conv_relu_ln(h, w_ref, b_ref, g_ref, be_ref, k, pad, T):
    """Conv1d('same') -> ReLU -> LayerNorm as a single im2col matmul (f32 statistics)."""
    xc = _im2col(h, k, pad, T).astype(jnp.bfloat16)
    a = jnp.dot(xc, w_ref[...], preferred_element_type=jnp.float32) + b_ref[...]
    a = jnp.maximum(a, 0.0)                                       # ReLU
    mu = jnp.mean(a, axis=-1, keepdims=True)
    var = jnp.mean(jnp.square(a - mu), axis=-1, keepdims=True)    # biased var, eps=1e-5
    return (a - mu) * lax.rsqrt(var + 1e-5) * g_ref[...] + be_ref[...]


# ----------------------------------------------------------------------------
# Kernel 1: duration predictor + emb1 convs + shared LengthRegulator
# ----------------------------------------------------------------------------
def _fused_duration_lr(pk, x, src_mask, src_pitch_r, src_energy_r, dur_clamped, max_mel_len):
    """Returns:
         log_dur: (B, S, 1)  f32  (masked duration-predictor output)
         lr_out : (B, M, 3H) f32  channel blocks [x_exp | x_exp+pitch_emb | x_exp+energy_emb]
    """
    B, S, H = x.shape
    R = src_pitch_r.shape[-1]
    M = max_mel_len
    dp = pk["dur"]
    L = len(dp["convs"])
    k = dp["k"]
    pad = (k - 1) // 2
    F = dp["convs"][0][0].shape[-1]

    ends = jnp.cumsum(dur_clamped, axis=1)                         # int32, exact
    starts = (ends - dur_clamped)[:, None, :].astype(jnp.int32)    # (B,1,S)
    ends = ends[:, None, :].astype(jnp.int32)
    mask_f = src_mask.astype(jnp.float32)[..., None]               # (B,S,1), 1.0 = pad

    flat_w, flat_specs = [], []
    for (w2, b2, g2, be2) in dp["convs"]:
        KC = w2.shape[0]
        flat_w += [w2, b2, g2, be2]
        flat_specs += [pl.BlockSpec((KC, F), lambda i: (0, 0)),
                       pl.BlockSpec((1, F), lambda i: (0, 0)),
                       pl.BlockSpec((1, F), lambda i: (0, 0)),
                       pl.BlockSpec((1, F), lambda i: (0, 0))]
    flat_w += [dp["lin_w"], dp["lin_b"],
               pk["p_emb1_w"], pk["p_emb1_b"], pk["e_emb1_w"], pk["e_emb1_b"]]
    flat_specs += [pl.BlockSpec((F, 1), lambda i: (0, 0)),
                   pl.BlockSpec((1, 1), lambda i: (0, 0)),
                   pl.BlockSpec((R, H), lambda i: (0, 0)),
                   pl.BlockSpec((1, H), lambda i: (0, 0)),
                   pl.BlockSpec((R, H), lambda i: (0, 0)),
                   pl.BlockSpec((1, H), lambda i: (0, 0))]

    def kernel(x_ref, m_ref, sp_ref, se_ref, st_ref, en_ref, *rest):
        conv_refs = [rest[4 * i:4 * i + 4] for i in range(L)]
        off = 4 * L
        lw_ref, lb_ref, p1w_ref, p1b_ref, e1w_ref, e1b_ref = rest[off:off + 6]
        ldur_ref, lr_ref = rest[off + 6], rest[off + 7]

        # --- duration VariancePredictor (all layers fused; dropout = identity) ---
        h = x_ref[0]                                               # (S, H) f32
        for (w2, b2, g2, be2) in conv_refs:
            h = _conv_relu_ln(h, w2, b2, g2, be2, k, pad, S)
        y = jnp.dot(h.astype(jnp.bfloat16), lw_ref[...],
                    preferred_element_type=jnp.float32) + lb_ref[...]
        ldur_ref[0] = jnp.where(m_ref[0] > 0.0, 0.0, y)            # masked_fill(mask, 0)

        # --- kernel-size-1 embedding convs on the (S, r) source pitch / energy ---
        p_src = jnp.dot(sp_ref[0].astype(jnp.bfloat16), p1w_ref[...],
                        preferred_element_type=jnp.float32) + p1b_ref[...]
        e_src = jnp.dot(se_ref[0].astype(jnp.bfloat16), e1w_ref[...],
                        preferred_element_type=jnp.float32) + e1b_ref[...]

        # --- LengthRegulator: one (M,S) selection matrix applied to [x | x+p | x+e] ---
        xb = x_ref[0]
        cat = jnp.concatenate([xb, xb + p_src, xb + e_src], axis=-1)     # (S, 3H)
        t = lax.broadcasted_iota(jnp.int32, (M, S), 0)
        sel = jnp.logical_and(t >= st_ref[0], t < en_ref[0]).astype(jnp.bfloat16)
        lr_ref[0] = jnp.dot(sel, cat.astype(jnp.bfloat16),
                            preferred_element_type=jnp.float32)          # (M, 3H)

    return pl.pallas_call(
        kernel,
        out_shape=(jax.ShapeDtypeStruct((B, S, 1), jnp.float32),
                   jax.ShapeDtypeStruct((B, M, 3 * H), jnp.float32)),
        grid=(B,),
        in_specs=[pl.BlockSpec((1, S, H), lambda i: (i, 0, 0)),
                  pl.BlockSpec((1, S, 1), lambda i: (i, 0, 0)),
                  pl.BlockSpec((1, S, R), lambda i: (i, 0, 0)),
                  pl.BlockSpec((1, S, R), lambda i: (i, 0, 0)),
                  pl.BlockSpec((1, 1, S), lambda i: (i, 0, 0)),
                  pl.BlockSpec((1, 1, S), lambda i: (i, 0, 0))] + flat_specs,
        out_specs=[pl.BlockSpec((1, S, 1), lambda i: (i, 0, 0)),
                   pl.BlockSpec((1, M, 3 * H), lambda i: (i, 0, 0))],
        compiler_params=_COMPILER_PARAMS,
    )(x, mask_f, src_pitch_r, src_energy_r, starts, ends, *flat_w)


# ----------------------------------------------------------------------------
# Kernel 2: pitch + energy predictors + emb2 projections + residual output
# ----------------------------------------------------------------------------
def _fused_pe_output(pk, lr_out, mel_len, r, p_control, e_control):
    """Returns pitch_pred (B,M,R), energy_pred (B,M,R), x_out (B,M,H)."""
    B, M, H3 = lr_out.shape
    H = H3 // 3
    R = r
    pp, ep = pk["pitch"], pk["energy"]
    Lp, Le = len(pp["convs"]), len(ep["convs"])
    kp, ke = pp["k"], ep["k"]
    padp, pade = (kp - 1) // 2, (ke - 1) // 2
    F = pp["convs"][0][0].shape[-1]

    flat_w, flat_specs = [], []

    def add_pred(p):
        for (w2, b2, g2, be2) in p["convs"]:
            KC = w2.shape[0]
            flat_w.extend([w2, b2, g2, be2])
            flat_specs.extend([pl.BlockSpec((KC, F), lambda i, ml: (0, 0)),
                               pl.BlockSpec((1, F), lambda i, ml: (0, 0)),
                               pl.BlockSpec((1, F), lambda i, ml: (0, 0)),
                               pl.BlockSpec((1, F), lambda i, ml: (0, 0))])
        flat_w.extend([p["lin_w"], p["lin_b"]])
        flat_specs.extend([pl.BlockSpec((F, R), lambda i, ml: (0, 0)),
                           pl.BlockSpec((1, R), lambda i, ml: (0, 0))])

    add_pred(pp)
    add_pred(ep)
    flat_w.extend([pk["p_emb2_w"], pk["p_emb2_b"], pk["e_emb2_w"], pk["e_emb2_b"]])
    flat_specs.extend([pl.BlockSpec((R, H), lambda i, ml: (0, 0)),
                       pl.BlockSpec((1, H), lambda i, ml: (0, 0)),
                       pl.BlockSpec((R, H), lambda i, ml: (0, 0)),
                       pl.BlockSpec((1, H), lambda i, ml: (0, 0))])

    def run_predictor(h, conv_refs, lw_ref, lb_ref, k, pad, pad_row):
        for (w2, b2, g2, be2) in conv_refs:
            h = _conv_relu_ln(h, w2, b2, g2, be2, k, pad, M)
        y = jnp.dot(h.astype(jnp.bfloat16), lw_ref[...],
                    preferred_element_type=jnp.float32) + lb_ref[...]
        return jnp.where(pad_row, 0.0, y)                          # masked_fill over rows

    def kernel(ml_ref, lr_ref, *rest):
        idx = 0
        p_convs = [rest[idx + 4 * i: idx + 4 * i + 4] for i in range(Lp)]
        idx += 4 * Lp
        plw, plb = rest[idx], rest[idx + 1]
        idx += 2
        e_convs = [rest[idx + 4 * i: idx + 4 * i + 4] for i in range(Le)]
        idx += 4 * Le
        elw, elb = rest[idx], rest[idx + 1]
        idx += 2
        p2w, p2b, e2w, e2b = rest[idx:idx + 4]
        idx += 4
        ppred_ref, epred_ref, xout_ref = rest[idx:idx + 3]

        b = pl.program_id(0)
        blk = lr_ref[0]                                            # (M, 3H) f32
        x_exp = blk[:, :H]
        pitch_in = blk[:, H:2 * H]
        energy_in = blk[:, 2 * H:]

        # mel pad mask built in-kernel from scalar-prefetched mel_len (True = pad)
        row = lax.broadcasted_iota(jnp.int32, (M, 1), 0)
        pad_row = row >= ml_ref[b]

        pred_p = run_predictor(pitch_in, p_convs, plw, plb, kp, padp, pad_row) * p_control
        pred_e = run_predictor(energy_in, e_convs, elw, elb, ke, pade, pad_row) * e_control
        ppred_ref[0] = pred_p
        epred_ref[0] = pred_e

        emb = (jnp.dot(pred_p.astype(jnp.bfloat16), p2w[...],
                       preferred_element_type=jnp.float32) + p2b[...]
               + jnp.dot(pred_e.astype(jnp.bfloat16), e2w[...],
                         preferred_element_type=jnp.float32) + e2b[...])
        xout_ref[0] = x_exp + emb                                   # x + pitch + energy

    grid_spec = pltpu.PrefetchScalarGridSpec(
        num_scalar_prefetch=1,
        grid=(B,),
        in_specs=[pl.BlockSpec((1, M, 3 * H), lambda i, ml: (i, 0, 0))] + flat_specs,
        out_specs=[pl.BlockSpec((1, M, R), lambda i, ml: (i, 0, 0)),
                   pl.BlockSpec((1, M, R), lambda i, ml: (i, 0, 0)),
                   pl.BlockSpec((1, M, H), lambda i, ml: (i, 0, 0))],
    )
    return pl.pallas_call(
        kernel,
        grid_spec=grid_spec,
        out_shape=(jax.ShapeDtypeStruct((B, M, R), jnp.float32),
                   jax.ShapeDtypeStruct((B, M, R), jnp.float32),
                   jax.ShapeDtypeStruct((B, M, H), jnp.float32)),
        compiler_params=_COMPILER_PARAMS,
    )(mel_len, lr_out, *flat_w)


# ----------------------------------------------------------------------------
# Module-level composition
# ----------------------------------------------------------------------------
def reshape_with_reduction_factor(x, max_len, r):
    B = x.shape[0]
    return x[:, :max_len * r].reshape(B, -1, r)


def variance_adaptor_forward(pk, x, src_mask, src_max_len, src_pitch, src_energy,
                             src_duration, max_mel_len, reduction_factor,
                             p_control=1.0, e_control=1.0):
    B, S, H = x.shape
    r = reduction_factor

    src_pitch_r = reshape_with_reduction_factor(src_pitch, src_max_len, r)
    src_energy_r = reshape_with_reduction_factor(src_energy, src_max_len, r)

    duration_rounded = src_duration                                  # ground-truth path
    dur_clamped = jnp.maximum(duration_rounded.astype(jnp.int32), 0)  # expand(max(d, 0))

    log_dur3, lr_out = _fused_duration_lr(pk, x, src_mask, src_pitch_r, src_energy_r,
                                          dur_clamped, max_mel_len)
    log_duration_prediction = log_dur3[..., 0]                       # (B, S)

    mel_len = jnp.sum(dur_clamped, axis=1).astype(jnp.int32)         # (B,)
    mel_mask = jnp.arange(max_mel_len)[None, :] >= mel_len[:, None]  # True = pad
    # TODO(synk): PyTorch recomputes max_len = max(mel_len) at runtime; max_mel_len is a
    # static argument chosen == max(sum(duration)) to keep TPU shapes static.

    pitch3, energy3, x_out = _fused_pe_output(pk, lr_out, mel_len, r, p_control, e_control)

    if r > 1:
        pitch_prediction = pitch3.reshape(B, max_mel_len * r)
        energy_prediction = energy3.reshape(B, max_mel_len * r)
    else:
        pitch_prediction = pitch3[..., 0]
        energy_prediction = energy3[..., 0]

    return (x_out, pitch_prediction, energy_prediction, log_duration_prediction,
            duration_rounded, mel_len, mel_mask)


# ----------------------------------------------------------------------------
# Deterministic parameter initialization + kernel-friendly packing
# ----------------------------------------------------------------------------
def _init_predictor(key, in_dim, filt, k, layers, r):
    convs = []
    keys = jax.random.split(key, layers + 1)
    cin = in_dim
    for i in range(layers):
        w = 0.1 * jax.random.normal(keys[i], (k, cin, filt), jnp.float32)
        convs.append((w, jnp.zeros((filt,), jnp.float32),
                      jnp.ones((filt,), jnp.float32), jnp.zeros((filt,), jnp.float32)))
        cin = filt
    lin_w = 0.1 * jax.random.normal(keys[-1], (filt, r), jnp.float32)
    lin_b = jnp.zeros((r,), jnp.float32)
    return {"convs": convs, "lin_w": lin_w, "lin_b": lin_b, "k": k}


def init_params(key, hidden, filt, kernel, layers, r):
    ks = jax.random.split(key, 8)
    return {
        "dur": _init_predictor(ks[0], hidden, filt, kernel, layers, 1),
        "pitch": _init_predictor(ks[1], hidden, filt, kernel, layers, r),
        "energy": _init_predictor(ks[2], hidden, filt, kernel, layers, r),
        "p_emb1_w": 0.1 * jax.random.normal(ks[3], (r, hidden), jnp.float32),
        "p_emb1_b": jnp.zeros((hidden,), jnp.float32),
        "e_emb1_w": 0.1 * jax.random.normal(ks[4], (r, hidden), jnp.float32),
        "e_emb1_b": jnp.zeros((hidden,), jnp.float32),
        "p_emb2_w": 0.1 * jax.random.normal(ks[5], (r, hidden), jnp.float32),
        "p_emb2_b": jnp.zeros((hidden,), jnp.float32),
        "e_emb2_w": 0.1 * jax.random.normal(ks[6], (r, hidden), jnp.float32),
        "e_emb2_b": jnp.zeros((hidden,), jnp.float32),
    }


def pack_params(params):
    """im2col-folded (k*Cin, Cout) bf16 conv weights, bf16 matmul weights,
    (1, C) f32 biases / LayerNorm affine."""
    def pack_predictor(p):
        convs = []
        for (w, b, g, beta) in p["convs"]:
            k, cin, cout = w.shape
            convs.append((w.reshape(k * cin, cout).astype(jnp.bfloat16),
                          b.reshape(1, -1), g.reshape(1, -1), beta.reshape(1, -1)))
        return {"convs": convs, "k": p["k"],
                "lin_w": p["lin_w"].astype(jnp.bfloat16),
                "lin_b": p["lin_b"].reshape(1, -1)}
    pk = {name: pack_predictor(params[name]) for name in ("dur", "pitch", "energy")}
    for name in ("p_emb1", "e_emb1", "p_emb2", "e_emb2"):
        pk[name + "_w"] = params[name + "_w"].astype(jnp.bfloat16)
        pk[name + "_b"] = params[name + "_b"].reshape(1, -1)
    return pk


# ----------------------------------------------------------------------------
# Example run
# ----------------------------------------------------------------------------
if __name__ == "__main__":
    B, S, H, FILT, K, LAYERS, R = 2, 8, 32, 32, 3, 2, 2
    MAX_MEL = 16  # == max over batch of sum(src_duration)

    params = init_params(jax.random.PRNGKey(42), H, FILT, K, LAYERS, R)
    packed = pack_params(params)

    key = jax.random.PRNGKey(0)
    k1, k2, k3 = jax.random.split(key, 3)
    x = jax.random.normal(k1, (B, S, H), jnp.float32)
    src_pitch = jax.random.normal(k2, (B, S * R), jnp.float32)
    src_energy = jax.random.normal(k3, (B, S * R), jnp.float32)

    src_len = jnp.array([8, 6], jnp.int32)
    src_mask = jnp.arange(S)[None, :] >= src_len[:, None]              # True = pad
    src_duration = jnp.array([[2, 2, 2, 2, 2, 2, 2, 2],
                              [3, 2, 2, 2, 2, 1, 0, 0]], jnp.int32)    # sums: 16, 12

    outs = variance_adaptor_forward(packed, x, src_mask, S, src_pitch, src_energy,
                                    src_duration, MAX_MEL, R)
    for o in outs:
        jax.block_until_ready(o)

    (x_out, pitch_pred, energy_pred, log_dur, dur_rounded, mel_len, mel_mask) = outs
    assert x_out.shape == (B, MAX_MEL, H)
    assert pitch_pred.shape == (B, MAX_MEL * R)
    assert energy_pred.shape == (B, MAX_MEL * R)
    assert log_dur.shape == (B, S)
    assert mel_mask.shape == (B, MAX_MEL)
    print("KERNEL_OK")
</pallas_src>

<mosaic_0001>
module attributes {stable_mosaic.version = 11 : i64} {
  func.func @kernel(%arg0: i32, %arg1: memref<1x8x32xf32, #tpu.memory_space<vmem>>, %arg2: memref<1x8x1xf32, #tpu.memory_space<vmem>>, %arg3: memref<1x8x2xf32, #tpu.memory_space<vmem>>, %arg4: memref<1x8x2xf32, #tpu.memory_space<vmem>>, %arg5: memref<1x1x8xi32, #tpu.memory_space<vmem>>, %arg6: memref<1x1x8xi32, #tpu.memory_space<vmem>>, %arg7: memref<96x32xbf16, #tpu.memory_space<vmem>>, %arg8: memref<1x32xf32, #tpu.memory_space<vmem>>, %arg9: memref<1x32xf32, #tpu.memory_space<vmem>>, %arg10: memref<1x32xf32, #tpu.memory_space<vmem>>, %arg11: memref<96x32xbf16, #tpu.memory_space<vmem>>, %arg12: memref<1x32xf32, #tpu.memory_space<vmem>>, %arg13: memref<1x32xf32, #tpu.memory_space<vmem>>, %arg14: memref<1x32xf32, #tpu.memory_space<vmem>>, %arg15: memref<32x1xbf16, #tpu.memory_space<vmem>>, %arg16: memref<1x1xf32, #tpu.memory_space<vmem>>, %arg17: memref<2x32xbf16, #tpu.memory_space<vmem>>, %arg18: memref<1x32xf32, #tpu.memory_space<vmem>>, %arg19: memref<2x32xbf16, #tpu.memory_space<vmem>>, %arg20: memref<1x32xf32, #tpu.memory_space<vmem>>, %arg21: memref<1x8x1xf32, #tpu.memory_space<vmem>>, %arg22: memref<1x16x96xf32, #tpu.memory_space<vmem>>) attributes {dimension_semantics = [#tpu.dimension_semantics<parallel>], iteration_bounds = array<i64: 2>, scalar_prefetch = 0 : i64, scratch_operands = 0 : i64, tpu.core_type = #tpu.core_type<tc>, window_params = [{transform_indices = @transform_0, window_bounds = array<i64: 1, 8, 32>}, {transform_indices = @transform_1, window_bounds = array<i64: 1, 8, 1>}, {transform_indices = @transform_2, window_bounds = array<i64: 1, 8, 2>}, {transform_indices = @transform_3, window_bounds = array<i64: 1, 8, 2>}, {transform_indices = @transform_4, window_bounds = array<i64: 1, 1, 8>}, {transform_indices = @transform_5, window_bounds = array<i64: 1, 1, 8>}, {pipeline_mode = #tpu.pipeline_mode<synchronous>, transform_indices = @transform_6, window_bounds = array<i64: 96, 32>}, {pipeline_mode = #tpu.pipeline_mode<synchronous>, transform_indices = @transform_7, window_bounds = array<i64: 1, 32>}, {pipeline_mode = #tpu.pipeline_mode<synchronous>, transform_indices = @transform_8, window_bounds = array<i64: 1, 32>}, {pipeline_mode = #tpu.pipeline_mode<synchronous>, transform_indices = @transform_9, window_bounds = array<i64: 1, 32>}, {pipeline_mode = #tpu.pipeline_mode<synchronous>, transform_indices = @transform_10, window_bounds = array<i64: 96, 32>}, {pipeline_mode = #tpu.pipeline_mode<synchronous>, transform_indices = @transform_11, window_bounds = array<i64: 1, 32>}, {pipeline_mode = #tpu.pipeline_mode<synchronous>, transform_indices = @transform_12, window_bounds = array<i64: 1, 32>}, {pipeline_mode = #tpu.pipeline_mode<synchronous>, transform_indices = @transform_13, window_bounds = array<i64: 1, 32>}, {pipeline_mode = #tpu.pipeline_mode<synchronous>, transform_indices = @transform_14, window_bounds = array<i64: 32, 1>}, {pipeline_mode = #tpu.pipeline_mode<synchronous>, transform_indices = @transform_15, window_bounds = array<i64: 1, 1>}, {pipeline_mode = #tpu.pipeline_mode<synchronous>, transform_indices = @transform_16, window_bounds = array<i64: 2, 32>}, {pipeline_mode = #tpu.pipeline_mode<synchronous>, transform_indices = @transform_17, window_bounds = array<i64: 1, 32>}, {pipeline_mode = #tpu.pipeline_mode<synchronous>, transform_indices = @transform_18, window_bounds = array<i64: 2, 32>}, {pipeline_mode = #tpu.pipeline_mode<synchronous>, transform_indices = @transform_19, window_bounds = array<i64: 1, 32>}, {transform_indices = @transform_20, window_bounds = array<i64: 1, 8, 1>}, {transform_indices = @transform_21, window_bounds = array<i64: 1, 16, 96>}]} {
    %c0 = arith.constant 0 : index
    %c0_0 = arith.constant 0 : index
    %c0_1 = arith.constant 0 : index
    %0 = vector.load %arg1[%c0, %c0_0, %c0_1] : memref<1x8x32xf32, #tpu.memory_space<vmem>>, vector<1x8x32xf32>
    %1 = vector.shape_cast %0 : vector<1x8x32xf32> to vector<8x32xf32>
    %c1_i32 = arith.constant 1 : i32
    %2 = tpu.dynamic_rotate %1 by %c1_i32 dim 0 : vector<8x32xf32>, i32 -> vector<8x32xf32>
    %3 = tpu.iota {dimensions = array<i32: 0>} : vector<8x32xi32>
    %c-1_i32 = arith.constant -1 : i32
    %4 = vector.broadcast %c-1_i32 : i32 to vector<8x32xi32>
    %5 = arith.addi %3, %4 : vector<8x32xi32>
    %c0_i32 = arith.constant 0 : i32
    %6 = vector.broadcast %c0_i32 : i32 to vector<8x32xi32>
    %7 = arith.cmpi sge, %5, %6 : vector<8x32xi32>
    %c-1_i32_2 = arith.constant -1 : i32
    %8 = vector.broadcast %c-1_i32_2 : i32 to vector<8x32xi32>
    %9 = arith.addi %3, %8 : vector<8x32xi32>
    %c8_i32 = arith.constant 8 : i32
    %10 = vector.broadcast %c8_i32 : i32 to vector<8x32xi32>
    %11 = arith.cmpi slt, %9, %10 : vector<8x32xi32>
    %12 = arith.andi %7, %11 : vector<8x32xi1>
    %cst = arith.constant 0.000000e+00 : f32
    %13 = vector.broadcast %cst : f32 to vector<8x32xf32>
    %14 = arith.select %12, %2, %13 : vector<8x32xi1>, vector<8x32xf32>
    %c7_i32 = arith.constant 7 : i32
    %15 = tpu.dynamic_rotate %1 by %c7_i32 dim 0 : vector<8x32xf32>, i32 -> vector<8x32xf32>
    %16 = tpu.iota {dimensions = array<i32: 0>} : vector<8x32xi32>
    %c1_i32_3 = arith.constant 1 : i32
    %17 = vector.broadcast %c1_i32_3 : i32 to vector<8x32xi32>
    %18 = arith.addi %16, %17 : vector<8x32xi32>
    %c0_i32_4 = arith.constant 0 : i32
    %19 = vector.broadcast %c0_i32_4 : i32 to vector<8x32xi32>
    %20 = arith.cmpi sge, %18, %19 : vector<8x32xi32>
    %c1_i32_5 = arith.constant 1 : i32
    %21 = vector.broadcast %c1_i32_5 : i32 to vector<8x32xi32>
    %22 = arith.addi %16, %21 : vector<8x32xi32>
    %c8_i32_6 = arith.constant 8 : i32
    %23 = vector.broadcast %c8_i32_6 : i32 to vector<8x32xi32>
    %24 = arith.cmpi slt, %22, %23 : vector<8x32xi32>
    %25 = arith.andi %20, %24 : vector<8x32xi1>
    %cst_7 = arith.constant 0.000000e+00 : f32
    %26 = vector.broadcast %cst_7 : f32 to vector<8x32xf32>
    %27 = arith.select %25, %15, %26 : vector<8x32xi1>, vector<8x32xf32>
    %28 = tpu.concatenate %14, %1, %27 in 1 : vector<8x32xf32>, vector<8x32xf32>, vector<8x32xf32> -> vector<8x96xf32>
    %29 = arith.truncf %28 : vector<8x96xf32> to vector<8x96xbf16>
    %c0_8 = arith.constant 0 : index
    %c0_9 = arith.constant 0 : index
    %30 = vector.load %arg7[%c0_8, %c0_9] : memref<96x32xbf16, #tpu.memory_space<vmem>>, vector<96x32xbf16>
    %cst_10 = arith.constant dense<0.000000e+00> : vector<8x32xf32>
    %31 = tpu.matmul %29, %30, %cst_10 {dimension_numbers = #tpu.dot_dimension_numbers<[1], [0], [0], [1], [0, 0, 1, 1], [], []>} : vector<8x96xbf16>, vector<96x32xbf16>, vector<8x32xf32> -> vector<8x32xf32>
    %c0_11 = arith.constant 0 : index
    %c0_12 = arith.constant 0 : index
    %32 = vector.load %arg8[%c0_11, %c0_12] : memref<1x32xf32, #tpu.memory_space<vmem>>, vector<1x32xf32>
    %33 = vector.broadcast %32 : vector<1x32xf32> to vector<8x32xf32>
    %34 = arith.addf %31, %33 : vector<8x32xf32>
    %cst_13 = arith.constant 0.000000e+00 : f32
    %35 = vector.broadcast %cst_13 : f32 to vector<8x32xf32>
    %36 = arith.maximumf %34, %35 : vector<8x32xf32>
    %cst_14 = arith.constant dense<0.000000e+00> : vector<8xf32>
    %37 = vector.multi_reduction <add>, %36, %cst_14 [1] : vector<8x32xf32> to vector<8xf32>
    %38 = vector.shape_cast %37 : vector<8xf32> to vector<8x1xf32>
    %cst_15 = arith.constant 3.200000e+01 : f32
    %39 = vector.broadcast %cst_15 : f32 to vector<8x1xf32>
    %40 = arith.divf %38, %39 : vector<8x1xf32>
    %41 = vector.broadcast %40 : vector<8x1xf32> to vector<8x32xf32>
    %42 = arith.subf %36, %41 : vector<8x32xf32>
    %43 = arith.mulf %42, %42 : vector<8x32xf32>
    %cst_16 = arith.constant dense<0.000000e+00> : vector<8xf32>
    %44 = vector.multi_reduction <add>, %43, %cst_16 [1] : vector<8x32xf32> to vector<8xf32>
    %45 = vector.shape_cast %44 : vector<8xf32> to vector<8x1xf32>
    %cst_17 = arith.constant 3.200000e+01 : f32
    %46 = vector.broadcast %cst_17 : f32 to vector<8x1xf32>
    %47 = arith.divf %45, %46 : vector<8x1xf32>
    %48 = vector.broadcast %40 : vector<8x1xf32> to vector<8x32xf32>
    %49 = arith.subf %36, %48 : vector<8x32xf32>
    %cst_18 = arith.constant 9.99999974E-6 : f32
    %50 = vector.broadcast %cst_18 : f32 to vector<8x1xf32>
    %51 = arith.addf %47, %50 : vector<8x1xf32>
    %52 = math.rsqrt %51 : vector<8x1xf32>
    %53 = vector.broadcast %52 : vector<8x1xf32> to vector<8x32xf32>
    %54 = arith.mulf %49, %53 : vector<8x32xf32>
    %c0_19 = arith.constant 0 : index
    %c0_20 = arith.constant 0 : index
    %55 = vector.load %arg9[%c0_19, %c0_20] : memref<1x32xf32, #tpu.memory_space<vmem>>, vector<1x32xf32>
    %56 = vector.broadcast %55 : vector<1x32xf32> to vector<8x32xf32>
    %57 = arith.mulf %54, %56 : vector<8x32xf32>
    %c0_21 = arith.constant 0 : index
    %c0_22 = arith.constant 0 : index
    %58 = vector.load %arg10[%c0_21, %c0_22] : memref<1x32xf32, #tpu.memory_space<vmem>>, vector<1x32xf32>
    %59 = vector.broadcast %58 : vector<1x32xf32> to vector<8x32xf32>
    %60 = arith.addf %57, %59 : vector<8x32xf32>
    %c1_i32_23 = arith.constant 1 : i32
    %61 = tpu.dynamic_rotate %60 by %c1_i32_23 dim 0 : vector<8x32xf32>, i32 -> vector<8x32xf32>
    %62 = tpu.iota {dimensions = array<i32: 0>} : vector<8x32xi32>
    %c-1_i32_24 = arith.constant -1 : i32
    %63 = vector.broadcast %c-1_i32_24 : i32 to vector<8x32xi32>
    %64 = arith.addi %62, %63 : vector<8x32xi32>
    %c0_i32_25 = arith.constant 0 : i32
    %65 = vector.broadcast %c0_i32_25 : i32 to vector<8x32xi32>
    %66 = arith.cmpi sge, %64, %65 : vector<8x32xi32>
    %c-1_i32_26 = arith.constant -1 : i32
    %67 = vector.broadcast %c-1_i32_26 : i32 to vector<8x32xi32>
    %68 = arith.addi %62, %67 : vector<8x32xi32>
    %c8_i32_27 = arith.constant 8 : i32
    %69 = vector.broadcast %c8_i32_27 : i32 to vector<8x32xi32>
    %70 = arith.cmpi slt, %68, %69 : vector<8x32xi32>
    %71 = arith.andi %66, %70 : vector<8x32xi1>
    %cst_28 = arith.constant 0.000000e+00 : f32
    %72 = vector.broadcast %cst_28 : f32 to vector<8x32xf32>
    %73 = arith.select %71, %61, %72 : vector<8x32xi1>, vector<8x32xf32>
    %c7_i32_29 = arith.constant 7 : i32
    %74 = tpu.dynamic_rotate %60 by %c7_i32_29 dim 0 : vector<8x32xf32>, i32 -> vector<8x32xf32>
    %75 = tpu.iota {dimensions = array<i32: 0>} : vector<8x32xi32>
    %c1_i32_30 = arith.constant 1 : i32
    %76 = vector.broadcast %c1_i32_30 : i32 to vector<8x32xi32>
    %77 = arith.addi %75, %76 : vector<8x32xi32>
    %c0_i32_31 = arith.constant 0 : i32
    %78 = vector.broadcast %c0_i32_31 : i32 to vector<8x32xi32>
    %79 = arith.cmpi sge, %77, %78 : vector<8x32xi32>
    %c1_i32_32 = arith.constant 1 : i32
    %80 = vector.broadcast %c1_i32_32 : i32 to vector<8x32xi32>
    %81 = arith.addi %75, %80 : vector<8x32xi32>
    %c8_i32_33 = arith.constant 8 : i32
    %82 = vector.broadcast %c8_i32_33 : i32 to vector<8x32xi32>
    %83 = arith.cmpi slt, %81, %82 : vector<8x32xi32>
    %84 = arith.andi %79, %83 : vector<8x32xi1>
    %cst_34 = arith.constant 0.000000e+00 : f32
    %85 = vector.broadcast %cst_34 : f32 to vector<8x32xf32>
    %86 = arith.select %84, %74, %85 : vector<8x32xi1>, vector<8x32xf32>
    %87 = tpu.concatenate %73, %60, %86 in 1 : vector<8x32xf32>, vector<8x32xf32>, vector<8x32xf32> -> vector<8x96xf32>
    %88 = arith.truncf %87 : vector<8x96xf32> to vector<8x96xbf16>
    %c0_35 = arith.constant 0 : index
    %c0_36 = arith.constant 0 : index
    %89 = vector.load %arg11[%c0_35, %c0_36] : memref<96x32xbf16, #tpu.memory_space<vmem>>, vector<96x32xbf16>
    %cst_37 = arith.constant dense<0.000000e+00> : vector<8x32xf32>
    %90 = tpu.matmul %88, %89, %cst_37 {dimension_numbers = #tpu.dot_dimension_numbers<[1], [0], [0], [1], [0, 0, 1, 1], [], []>} : vector<8x96xbf16>, vector<96x32xbf16>, vector<8x32xf32> -> vector<8x32xf32>
    %c0_38 = arith.constant 0 : index
    %c0_39 = arith.constant 0 : index
    %91 = vector.load %arg12[%c0_38, %c0_39] : memref<1x32xf32, #tpu.memory_space<vmem>>, vector<1x32xf32>
    %92 = vector.broadcast %91 : vector<1x32xf32> to vector<8x32xf32>
    %93 = arith.addf %90, %92 : vector<8x32xf32>
    %cst_40 = arith.constant 0.000000e+00 : f32
    %94 = vector.broadcast %cst_40 : f32 to vector<8x32xf32>
    %95 = arith.maximumf %93, %94 : vector<8x32xf32>
    %cst_41 = arith.constant dense<0.000000e+00> : vector<8xf32>
    %96 = vector.multi_reduction <add>, %95, %cst_41 [1] : vector<8x32xf32> to vector<8xf32>
    %97 = vector.shape_cast %96 : vector<8xf32> to vector<8x1xf32>
    %cst_42 = arith.constant 3.200000e+01 : f32
    %98 = vector.broadcast %cst_42 : f32 to vector<8x1xf32>
    %99 = arith.divf %97, %98 : vector<8x1xf32>
    %100 = vector.broadcast %99 : vector<8x1xf32> to vector<8x32xf32>
    %101 = arith.subf %95, %100 : vector<8x32xf32>
    %102 = arith.mulf %101, %101 : vector<8x32xf32>
    %cst_43 = arith.constant dense<0.000000e+00> : vector<8xf32>
    %103 = vector.multi_reduction <add>, %102, %cst_43 [1] : vector<8x32xf32> to vector<8xf32>
    %104 = vector.shape_cast %103 : vector<8xf32> to vector<8x1xf32>
    %cst_44 = arith.constant 3.200000e+01 : f32
    %105 = vector.broadcast %cst_44 : f32 to vector<8x1xf32>
    %106 = arith.divf %104, %105 : vector<8x1xf32>
    %107 = vector.broadcast %99 : vector<8x1xf32> to vector<8x32xf32>
    %108 = arith.subf %95, %107 : vector<8x32xf32>
    %cst_45 = arith.constant 9.99999974E-6 : f32
    %109 = vector.broadcast %cst_45 : f32 to vector<8x1xf32>
    %110 = arith.addf %106, %109 : vector<8x1xf32>
    %111 = math.rsqrt %110 : vector<8x1xf32>
    %112 = vector.broadcast %111 : vector<8x1xf32> to vector<8x32xf32>
    %113 = arith.mulf %108, %112 : vector<8x32xf32>
    %c0_46 = arith.constant 0 : index
    %c0_47 = arith.constant 0 : index
    %114 = vector.load %arg13[%c0_46, %c0_47] : memref<1x32xf32, #tpu.memory_space<vmem>>, vector<1x32xf32>
    %115 = vector.broadcast %114 : vector<1x32xf32> to vector<8x32xf32>
    %116 = arith.mulf %113, %115 : vector<8x32xf32>
    %c0_48 = arith.constant 0 : index
    %c0_49 = arith.constant 0 : index
    %117 = vector.load %arg14[%c0_48, %c0_49] : memref<1x32xf32, #tpu.memory_space<vmem>>, vector<1x32xf32>
    %118 = vector.broadcast %117 : vector<1x32xf32> to vector<8x32xf32>
    %119 = arith.addf %116, %118 : vector<8x32xf32>
    %120 = arith.truncf %119 : vector<8x32xf32> to vector<8x32xbf16>
    %c0_50 = arith.constant 0 : index
    %c0_51 = arith.constant 0 : index
    %121 = vector.load %arg15[%c0_50, %c0_51] : memref<32x1xbf16, #tpu.memory_space<vmem>>, vector<32x1xbf16>
    %cst_52 = arith.constant dense<0.000000e+00> : vector<8x1xf32>
    %122 = tpu.matmul %120, %121, %cst_52 {dimension_numbers = #tpu.dot_dimension_numbers<[1], [0], [0], [1], [0, 0, 1, 1], [], []>} : vector<8x32xbf16>, vector<32x1xbf16>, vector<8x1xf32> -> vector<8x1xf32>
    %c0_53 = arith.constant 0 : index
    %c0_54 = arith.constant 0 : index
    %123 = vector.load %arg16[%c0_53, %c0_54] : memref<1x1xf32, #tpu.memory_space<vmem>>, vector<1x1xf32>
    %124 = vector.broadcast %123 : vector<1x1xf32> to vector<8x1xf32>
    %125 = arith.addf %122, %124 : vector<8x1xf32>
    %c0_55 = arith.constant 0 : index
    %c0_56 = arith.constant 0 : index
    %c0_57 = arith.constant 0 : index
    %126 = vector.load %arg2[%c0_55, %c0_56, %c0_57] : memref<1x8x1xf32, #tpu.memory_space<vmem>>, vector<1x8x1xf32>
    %127 = vector.shape_cast %126 : vector<1x8x1xf32> to vector<8x1xf32>
    %cst_58 = arith.constant 0.000000e+00 : f32
    %128 = vector.broadcast %cst_58 : f32 to vector<8x1xf32>
    %129 = arith.cmpf ogt, %127, %128 : vector<8x1xf32>
    %cst_59 = arith.constant 0.000000e+00 : f32
    %130 = vector.broadcast %cst_59 : f32 to vector<8x1xf32>
    %131 = arith.select %129, %130, %125 : vector<8x1xi1>, vector<8x1xf32>
    %c0_60 = arith.constant 0 : index
    %c0_61 = arith.constant 0 : index
    %c0_62 = arith.constant 0 : index
    %132 = vector.load %arg21[%c0_60, %c0_61, %c0_62] : memref<1x8x1xf32, #tpu.memory_space<vmem>>, vector<1x8x1xf32>
    %133 = vector.shape_cast %132 : vector<1x8x1xf32> to vector<8x1xf32>
    %134 = vector.shape_cast %131 : vector<8x1xf32> to vector<1x8x1xf32>
    tpu.vector_store %arg21[%c0_60, %c0_61, %c0_62], %134 {strides = array<i32>} : memref<1x8x1xf32, #tpu.memory_space<vmem>>, vector<1x8x1xf32>,
    %c0_63 = arith.constant 0 : index
    %c0_64 = arith.constant 0 : index
    %c0_65 = arith.constant 0 : index
    %135 = vector.load %arg3[%c0_63, %c0_64, %c0_65] : memref<1x8x2xf32, #tpu.memory_space<vmem>>, vector<1x8x2xf32>
    %136 = vector.shape_cast %135 : vector<1x8x2xf32> to vector<8x2xf32>
    %137 = arith.truncf %136 : vector<8x2xf32> to vector<8x2xbf16>
    %c0_66 = arith.constant 0 : index
    %c0_67 = arith.constant 0 : index
    %138 = vector.load %arg17[%c0_66, %c0_67] : memref<2x32xbf16, #tpu.memory_space<vmem>>, vector<2x32xbf16>
    %cst_68 = arith.constant dense<0.000000e+00> : vector<8x32xf32>
    %139 = tpu.matmul %137, %138, %cst_68 {dimension_numbers = #tpu.dot_dimension_numbers<[1], [0], [0], [1], [0, 0, 1, 1], [], []>} : vector<8x2xbf16>, vector<2x32xbf16>, vector<8x32xf32> -> vector<8x32xf32>
    %c0_69 = arith.constant 0 : index
    %c0_70 = arith.constant 0 : index
    %140 = vector.load %arg18[%c0_69, %c0_70] : memref<1x32xf32, #tpu.memory_space<vmem>>, vector<1x32xf32>
    %141 = vector.broadcast %140 : vector<1x32xf32> to vector<8x32xf32>
    %142 = arith.addf %139, %141 : vector<8x32xf32>
    %c0_71 = arith.constant 0 : index
    %c0_72 = arith.constant 0 : index
    %c0_73 = arith.constant 0 : index
    %143 = vector.load %arg4[%c0_71, %c0_72, %c0_73] : memref<1x8x2xf32, #tpu.memory_space<vmem>>, vector<1x8x2xf32>
    %144 = vector.shape_cast %143 : vector<1x8x2xf32> to vector<8x2xf32>
    %145 = arith.truncf %144 : vector<8x2xf32> to vector<8x2xbf16>
    %c0_74 = arith.constant 0 : index
    %c0_75 = arith.constant 0 : index
    %146 = vector.load %arg19[%c0_74, %c0_75] : memref<2x32xbf16, #tpu.memory_space<vmem>>, vector<2x32xbf16>
    %cst_76 = arith.constant dense<0.000000e+00> : vector<8x32xf32>
    %147 = tpu.matmul %145, %146, %cst_76 {dimension_numbers = #tpu.dot_dimension_numbers<[1], [0], [0], [1], [0, 0, 1, 1], [], []>} : vector<8x2xbf16>, vector<2x32xbf16>, vector<8x32xf32> -> vector<8x32xf32>
    %c0_77 = arith.constant 0 : index
    %c0_78 = arith.constant 0 : index
    %148 = vector.load %arg20[%c0_77, %c0_78] : memref<1x32xf32, #tpu.memory_space<vmem>>, vector<1x32xf32>
    %149 = vector.broadcast %148 : vector<1x32xf32> to vector<8x32xf32>
    %150 = arith.addf %147, %149 : vector<8x32xf32>
    %c0_79 = arith.constant 0 : index
    %c0_80 = arith.constant 0 : index
    %c0_81 = arith.constant 0 : index
    %151 = vector.load %arg1[%c0_79, %c0_80, %c0_81] : memref<1x8x32xf32, #tpu.memory_space<vmem>>, vector<1x8x32xf32>
    %152 = vector.shape_cast %151 : vector<1x8x32xf32> to vector<8x32xf32>
    %153 = arith.addf %152, %142 : vector<8x32xf32>
    %154 = arith.addf %152, %150 : vector<8x32xf32>
    %155 = tpu.concatenate %152, %153, %154 in 1 : vector<8x32xf32>, vector<8x32xf32>, vector<8x32xf32> -> vector<8x96xf32>
    %156 = tpu.iota {dimensions = array<i32: 0>} : vector<16x8xi32>
    %c0_82 = arith.constant 0 : index
    %c0_83 = arith.constant 0 : index
    %c0_84 = arith.constant 0 : index
    %157 = vector.load %arg5[%c0_82, %c0_83, %c0_84] : memref<1x1x8xi32, #tpu.memory_space<vmem>>, vector<1x1x8xi32>
    %158 = vector.shape_cast %157 : vector<1x1x8xi32> to vector<1x8xi32>
    %159 = vector.broadcast %158 : vector<1x8xi32> to vector<16x8xi32>
    %160 = arith.cmpi sge, %156, %159 : vector<16x8xi32>
    %c0_85 = arith.constant 0 : index
    %c0_86 = arith.constant 0 : index
    %c0_87 = arith.constant 0 : index
    %161 = vector.load %arg6[%c0_85, %c0_86, %c0_87] : memref<1x1x8xi32, #tpu.memory_space<vmem>>, vector<1x1x8xi32>
    %162 = vector.shape_cast %161 : vector<1x1x8xi32> to vector<1x8xi32>
    %163 = vector.broadcast %162 : vector<1x8xi32> to vector<16x8xi32>
    %164 = arith.cmpi slt, %156, %163 : vector<16x8xi32>
    %165 = arith.andi %160, %164 : vector<16x8xi1>
    %166 = arith.extui %165 : vector<16x8xi1> to vector<16x8xi32>
    %167 = arith.sitofp %166 : vector<16x8xi32> to vector<16x8xf32>
    %168 = arith.truncf %167 : vector<16x8xf32> to vector<16x8xbf16>
    %169 = arith.truncf %155 : vector<8x96xf32> to vector<8x96xbf16>
    %cst_88 = arith.constant dense<0.000000e+00> : vector<16x96xf32>
    %170 = tpu.matmul %168, %169, %cst_88 {dimension_numbers = #tpu.dot_dimension_numbers<[1], [0], [0], [1], [0, 0, 1, 1], [], []>} : vector<16x8xbf16>, vector<8x96xbf16>, vector<16x96xf32> -> vector<16x96xf32>
    %c0_89 = arith.constant 0 : index
    %c0_90 = arith.constant 0 : index
    %c0_91 = arith.constant 0 : index
    %171 = vector.load %arg22[%c0_89, %c0_90, %c0_91] : memref<1x16x96xf32, #tpu.memory_space<vmem>>, vector<1x16x96xf32>
    %172 = vector.shape_cast %171 : vector<1x16x96xf32> to vector<16x96xf32>
    %173 = vector.shape_cast %170 : vector<16x96xf32> to vector<1x16x96xf32>
    tpu.vector_store %arg22[%c0_89, %c0_90, %c0_91], %173 {strides = array<i32>} : memref<1x16x96xf32, #tpu.memory_space<vmem>>, vector<1x16x96xf32>,
    return
  }
  func.func @transform_0(%arg0: i32) -> (i32, i32, i32) {
    %c0_i32 = arith.constant 0 : i32
    %c0_i32_0 = arith.constant 0 : i32
    %c0_i32_1 = arith.constant 0 : i32
    return %arg0, %c0_i32, %c0_i32_0 : i32, i32, i32
  }
  func.func @transform_1(%arg0: i32) -> (i32, i32, i32) {
    %c0_i32 = arith.constant 0 : i32
    %c0_i32_0 = arith.constant 0 : i32
    %c0_i32_1 = arith.constant 0 : i32
    return %arg0, %c0_i32, %c0_i32_0 : i32, i32, i32
  }
  func.func @transform_2(%arg0: i32) -> (i32, i32, i32) {
    %c0_i32 = arith.constant 0 : i32
    %c0_i32_0 = arith.constant 0 : i32
    %c0_i32_1 = arith.constant 0 : i32
    return %arg0, %c0_i32, %c0_i32_0 : i32, i32, i32
  }
  func.func @transform_3(%arg0: i32) -> (i32, i32, i32) {
    %c0_i32 = arith.constant 0 : i32
    %c0_i32_0 = arith.constant 0 : i32
    %c0_i32_1 = arith.constant 0 : i32
    return %arg0, %c0_i32, %c0_i32_0 : i32, i32, i32
  }
  func.func @transform_4(%arg0: i32) -> (i32, i32, i32) {
    %c0_i32 = arith.constant 0 : i32
    %c0_i32_0 = arith.constant 0 : i32
    %c0_i32_1 = arith.constant 0 : i32
    return %arg0, %c0_i32, %c0_i32_0 : i32, i32, i32
  }
  func.func @transform_5(%arg0: i32) -> (i32, i32, i32) {
    %c0_i32 = arith.constant 0 : i32
    %c0_i32_0 = arith.constant 0 : i32
    %c0_i32_1 = arith.constant 0 : i32
    return %arg0, %c0_i32, %c0_i32_0 : i32, i32, i32
  }
  func.func @transform_6(%arg0: i32) -> (i32, i32) {
    %c0_i32 = arith.constant 0 : i32
    %c0_i32_0 = arith.constant 0 : i32
    %c0_i32_1 = arith.constant 0 : i32
    return %c0_i32, %c0_i32_0 : i32, i32
  }
  func.func @transform_7(%arg0: i32) -> (i32, i32) {
    %c0_i32 = arith.constant 0 : i32
    %c0_i32_0 = arith.constant 0 : i32
    %c0_i32_1 = arith.constant 0 : i32
    return %c0_i32, %c0_i32_0 : i32, i32
  }
  func.func @transform_8(%arg0: i32) -> (i32, i32) {
    %c0_i32 = arith.constant 0 : i32
    %c0_i32_0 = arith.constant 0 : i32
    %c0_i32_1 = arith.constant 0 : i32
    return %c0_i32, %c0_i32_0 : i32, i32
  }
  func.func @transform_9(%arg0: i32) -> (i32, i32) {
    %c0_i32 = arith.constant 0 : i32
    %c0_i32_0 = arith.constant 0 : i32
    %c0_i32_1 = arith.constant 0 : i32
    return %c0_i32, %c0_i32_0 : i32, i32
  }
  func.func @transform_10(%arg0: i32) -> (i32, i32) {
    %c0_i32 = arith.constant 0 : i32
    %c0_i32_0 = arith.constant 0 : i32
    %c0_i32_1 = arith.constant 0 : i32
    return %c0_i32, %c0_i32_0 : i32, i32
  }
  func.func @transform_11(%arg0: i32) -> (i32, i32) {
    %c0_i32 = arith.constant 0 : i32
    %c0_i32_0 = arith.constant 0 : i32
    %c0_i32_1 = arith.constant 0 : i32
    return %c0_i32, %c0_i32_0 : i32, i32
  }
  func.func @transform_12(%arg0: i32) -> (i32, i32) {
    %c0_i32 = arith.constant 0 : i32
    %c0_i32_0 = arith.constant 0 : i32
    %c0_i32_1 = arith.constant 0 : i32
    return %c0_i32, %c0_i32_0 : i32, i32
  }
  func.func @transform_13(%arg0: i32) -> (i32, i32) {
    %c0_i32 = arith.constant 0 : i32
    %c0_i32_0 = arith.constant 0 : i32
    %c0_i32_1 = arith.constant 0 : i32
    return %c0_i32, %c0_i32_0 : i32, i32
  }
  func.func @transform_14(%arg0: i32) -> (i32, i32) {
    %c0_i32 = arith.constant 0 : i32
    %c0_i32_0 = arith.constant 0 : i32
    %c0_i32_1 = arith.constant 0 : i32
    return %c0_i32, %c0_i32_0 : i32, i32
  }
  func.func @transform_15(%arg0: i32) -> (i32, i32) {
    %c0_i32 = arith.constant 0 : i32
    %c0_i32_0 = arith.constant 0 : i32
    %c0_i32_1 = arith.constant 0 : i32
    return %c0_i32, %c0_i32_0 : i32, i32
  }
  func.func @transform_16(%arg0: i32) -> (i32, i32) {
    %c0_i32 = arith.constant 0 : i32
    %c0_i32_0 = arith.constant 0 : i32
    %c0_i32_1 = arith.constant 0 : i32
    return %c0_i32, %c0_i32_0 : i32, i32
  }
  func.func @transform_17(%arg0: i32) -> (i32, i32) {
    %c0_i32 = arith.constant 0 : i32
    %c0_i32_0 = arith.constant 0 : i32
    %c0_i32_1 = arith.constant 0 : i32
    return %c0_i32, %c0_i32_0 : i32, i32
  }
  func.func @transform_18(%arg0: i32) -> (i32, i32) {
    %c0_i32 = arith.constant 0 : i32
    %c0_i32_0 = arith.constant 0 : i32
    %c0_i32_1 = arith.constant 0 : i32
    return %c0_i32, %c0_i32_0 : i32, i32
  }
  func.func @transform_19(%arg0: i32) -> (i32, i32) {
    %c0_i32 = arith.constant 0 : i32
    %c0_i32_0 = arith.constant 0 : i32
    %c0_i32_1 = arith.constant 0 : i32
    return %c0_i32, %c0_i32_0 : i32, i32
  }
  func.func @transform_20(%arg0: i32) -> (i32, i32, i32) {
    %c0_i32 = arith.constant 0 : i32
    %c0_i32_0 = arith.constant 0 : i32
    %c0_i32_1 = arith.constant 0 : i32
    return %arg0, %c0_i32, %c0_i32_0 : i32, i32, i32
  }
  func.func @transform_21(%arg0: i32) -> (i32, i32, i32) {
    %c0_i32 = arith.constant 0 : i32
    %c0_i32_0 = arith.constant 0 : i32
    %c0_i32_1 = arith.constant 0 : i32
    return %arg0, %c0_i32, %c0_i32_0 : i32, i32, i32
  }
}

</mosaic_0001>

<bundles_post_ra>
// kernel: tpu_custom_call.1
= control target key start
LH: loop header
LB: loop body
LE: loop exit
PB: predicated region body
PF: predicated region fallthrough
CT: control target
= control target key end

     0   :  { %s2147_s0 = inlined_call_operand.vmem [shape: f32[2,8,32], index: 0, kind: input, shape index: {}]   ;;  %s2148_s1 = inlined_call_operand.vmem [shape: f32[2,8,1], index: 1, kind: input, shape index: {}]   ;;  %s2149_s2 = inlined_call_operand.vmem [shape: f32[2,8,2], index: 2, kind: input, shape index: {}]   ;;  %s2150_s3 = inlined_call_operand.vmem [shape: f32[2,8,2], index: 3, kind: input, shape index: {}]   ;;  %s2151_s4 = inlined_call_operand.vmem [shape: s32[2,1,8], index: 4, kind: input, shape index: {}]   ;;  %s2152_s5 = inlined_call_operand.vmem [shape: s32[2,1,8], index: 5, kind: input, shape index: {}]   ;;  %s2153_s6 = inlined_call_operand.vmem [shape: bf16[96,32], index: 6, kind: input, shape index: {}]   ;;  %s2154_s7 = inlined_call_operand.vmem [shape: f32[1,32], index: 7, kind: input, shape index: {}]   ;;  %s2155_s8 = inlined_call_operand.vmem [shape: f32[1,32], index: 8, kind: input, shape index: {}]   ;;  %s2156_s9 = inlined_call_operand.vmem [shape: f32[1,32], index: 9, kind: input, shape index: {}]   ;;  %s2157_s10 = inlined_call_operand.vmem [shape: bf16[96,32], index: 10, kind: input, shape index: {}]   ;;  %s2158_s11 = inlined_call_operand.vmem [shape: f32[1,32], index: 11, kind: input, shape index: {}]   ;;  %s2159_s12 = inlined_call_operand.vmem [shape: f32[1,32], index: 12, kind: input, shape index: {}]   ;;  %s2160_s13 = inlined_call_operand.vmem [shape: f32[1,32], index: 13, kind: input, shape index: {}]   ;;  %s2161_s14 = inlined_call_operand.vmem [shape: bf16[32,1], index: 14, kind: input, shape index: {}]   ;;  %s2162_s15 = inlined_call_operand.<no memory space> [shape: f32[1,1], index: 15, kind: input, shape index: {}]   ;;  %s2163_s16 = inlined_call_operand.vmem [shape: bf16[2,32], index: 16, kind: input, shape index: {}]   ;;  %s2164_s17 = inlined_call_operand.vmem [shape: f32[1,32], index: 17, kind: input, shape index: {}]   ;;  %s2165_s18 = inlined_call_operand.vmem [shape: bf16[2,32], index: 18, kind: input, shape index: {}]   ;;  %s2166_s19 = inlined_call_operand.vmem [shape: f32[1,32], index: 19, kind: input, shape index: {}]   ;;  %s2167_s20 = inlined_call_operand.vmem [shape: f32[2,8,1], index: 20, kind: output, shape index: {0}]   ;;  %s2168_s21 = inlined_call_operand.hbm [shape: f32[2,16,96], index: 21, kind: output, shape index: {1}]  }
   0x1   :  { %2174 = sst [smem:[#allocation8_spill]] %s2147_s0  ;;  %v27_v0 = vstv %s2162_s15 }
   0x2   :  { %2175 = sst [smem:[#allocation9_spill]] %s2148_s1  ;;  %28 = vst [vmem:[#allocation2] sm:$0x1] %v27_v0 }
   0x3   :  { %2176 = sst [smem:[#allocation10_spill]] %s2149_s2 }
   0x4   :  { %2177 = sst [smem:[#allocation11_spill]] %s2150_s3 }
   0x5   :  { %2178 = sst [smem:[#allocation12_spill]] %s2151_s4 }
   0x6   :  { %2179 = sst [smem:[#allocation13_spill]] %s2152_s5 }
   0x7   :  { %2180 = sst [smem:[#allocation14_spill]] %s2153_s6 }
   0x8   :  { %2181 = sst [smem:[#allocation15_spill]] %s2154_s7 }
   0x9   :  { %2182 = sst [smem:[#allocation16_spill]] %s2155_s8 }
   0xa   :  { %2183 = sst [smem:[#allocation17_spill]] %s2156_s9 }
   0xb   :  { %29 = vsyncpa [#allocation4], 0 }
   0xc   :  { %31 = vsyncpa [#allocation4 + $0x1], 0  ;;  %s1857_s26 = smov 0   ;;  %s1859_s27 = smov 0  }
   0xd   :  { %s1861_s3 = smov 0   ;;  %s1863_s28 = smov 0  }
   0xe LB: > { %2184 = sst [smem:[#allocation6_spill]] %s1731_s3  ;;  %s1878_s15 = sadd.s32 4294967295, %s1735_s28   ;;  %s1735_s28 = sphi %s1863_s28, %s2204_s28   ;;  %s1731_s3 = sphi %s1861_s3, %s2201_s3   ;;  %s1727_s27 = sphi %s1859_s27, %s2203_s27   ;;  %s1723_s26 = sphi %s1857_s26, %s2202_s26  }
   0xf   : > { %s1480_s29 = sadd.s32 4294967294, %s1735_s28   ;;  %s1882_s0 = sadd.s32 1, %s1735_s28  }
  0x10   : > { %s520_s4 = sadd.s32 1, %s1731_s3  ;;  %s517_s30 = ssub.s32 %s1735_s28, %s1882_s0 }
  0x11   : > { %p530_p0 = scmp.ne.s32.totalorder %s1731_s3, %s1727_s27  ;;  %p518_p1 = scmp.eq.s32.totalorder %s517_s30, 0 }
  0x12   : > { %p531_p2 = scmp.eq.s32.totalorder %s1878_s15, 1  ;;  %p536_p3 = scmp.ne.s32.totalorder %s1727_s27, %s1723_s26 }
  0x13   : > { %p537_p4 = scmp.eq.s32.totalorder %s1480_s29, 1  ;;  %p1483_p7 = scmp.ge.s32.totalorder %s1735_s28, 1 }
  0x14   : > { %s1893_s5 = scalar_select %p518_p1, %s1731_s3, %s520_s4  }
  0x15   : > { %p1895_p5 = por %p531_p2, %p530_p0  ;;  %p1899_p6 = por %p537_p4, %p536_p3 }
  0x16   : > { %2185 = sst [smem:[#allocation7_spill]] %s1893_s5  ;;  %p637_p8 = scmp.lt.s32.totalorder %s1735_s28, 3 }
  0x18   : > { %p638_p9 = pnand %p1483_p7, %p637_p8 }
  0x19   : > { %p718_p10 = scmp.lt.s32.totalorder (!%p638_p9), %s1878_s15, 1  ;;  %v747_v1 = vlaneseq (!%p638_p9)  ;;  %s2188_s6 = sld [smem:[#allocation14_spill]] (!%p638_p9)  ;;  %v1737_v3 = vmov (!%p638_p9), 0.0   ;;  %vm1739_vm1 = vmmov (!%p638_p9), 0   ;;  %vm768_vm3 = vcmask (!%p638_p9), 261120   ;;  %v1661_v35 = vld [vmem:[%s2157_s10] sm:$0xff] (!%p638_p9)  }
  0x1a   : > { %641 = sbr.rel (%p638_p9) target bundleno = 1916 (0x77c), region = 100  ;;  %1552 = vmatprep.subr.bf16.mxu0 (!%p638_p9), %v1737_v3  ;;  %1568 = vmatprep.subr.bf16.mxu1 (!%p638_p9), %v1737_v3  ;;  %s2189_s24 = sld [smem:[#allocation8_spill]] (!%p638_p9)  ;;  %vm770_vm4 = vcmask (!%p638_p9), 523264   ;;  %vm828_vm5 = vcmask (!%p638_p9), 785408   ;;  %v1662_v36 = vld [vmem:[%s2157_s10 + $0x8] sm:$0xff] (!%p638_p9)   ;;  %v1663_v37 = vld [vmem:[%s2157_s10 + $0x10] sm:$0xff] (!%p638_p9)  }
  0x1b   : > { %v1917_v5 = vshrl.u32 (!%p638_p9), %v747_v1, 7  ;;  %s2170_s3 = smov (!%p638_p9), 32   ;;  %1564 = vmatprep.mubr.msk.bf16.mxu0 (!%p638_p9), %vm1739_vm1, %v1737_v3  ;;  %1580 = vmatprep.mubr.msk.bf16.mxu1 (!%p638_p9), %vm1739_vm1, %v1737_v3  ;;  %s2172_s1 = smov (!%p638_p9), 64   ;;  %v1664_v38 = vld [vmem:[%s2157_s10 + $0x18] sm:$0xff] (!%p638_p9)   ;;  %v1665_v39 = vld [vmem:[%s2157_s10 + $0x20] sm:$0xff] (!%p638_p9)   ;;  %v1666_v43 = vld [vmem:[%s2157_s10 + $0x28] sm:$0xff] (!%p638_p9)  }
  0x1c   : > { %s2190_s7 = sld [smem:[#allocation15_spill]] (!%p638_p9)  ;;  %1569 = vmatpush3.bf16.msra.mxu1 (!%p638_p9), %v1661_v35  ;;  %s2191_s8 = sld [smem:[#allocation16_spill]] (!%p638_p9)  ;;  %v1500_v59 = vld [vmem:[%s2158_s11] ss:$0 sm:$0xff] (!%p638_p9)  ;;  %vm1132_vm6 = vcmask (!%p638_p9), 1040384   ;;  %vm1128_vm7 = vcmask (!%p638_p9), 15360  }
  0x1d   : > { %v1924_v6 = vadd.s32 (!%p638_p9), 1, %v1917_v5  ;;  %v1961_v14 = vadd.s32 (!%p638_p9), 4294967295, %v1917_v5  ;;  %1570 = vmatprep.subr.bf16.mxu1 (!%p638_p9), %v1737_v3  ;;  %s2192_s9 = sld [smem:[#allocation17_spill]] (!%p638_p9)  ;;  %s2193_s30 = smov (!%p638_p9), 32   ;;  %vm1116_vm9 = vcmask (!%p638_p9), 7168  }
  0x1f   : > { %v1655_v2 = vld [vmem:[%s2188_s6] sm:$0xff] (!%p638_p9)   ;;  %v1656_v4 = vld [vmem:[%s2188_s6 + $0x8] sm:$0xff] (!%p638_p9)   ;;  %vm757_vm0 = vcmp.lt.s32.totalorder (!%p638_p9), %v1924_v6, 8  ;;  %v1657_v8 = vld [vmem:[%s2188_s6 + $0x10] sm:$0xff] (!%p638_p9)   ;;  %vm750_vm2 = vcmp.ge.s32.totalorder (!%p638_p9), %v1961_v14, 0 }
  0x20   : > { %1553 = vmatpush3.bf16.msra.mxu0 (!%p638_p9), %v1655_v2  ;;  %v1658_v11 = vld [vmem:[%s2188_s6 + $0x18] sm:$0xff] (!%p638_p9)   ;;  %v1659_v12 = vld [vmem:[%s2188_s6 + $0x20] sm:$0xff] (!%p638_p9)   ;;  %v1660_v13 = vld [vmem:[%s2188_s6 + $0x28] sm:$0xff] (!%p638_p9)   ;;  %1571 = vmatpush3.bf16.msra.mxu1 (!%p638_p9), %v1662_v36  ;;  %s2199_s6 = sld [smem:[#allocation13_spill]] (!%p638_p9) }
  0x21   : > { %s1915_s29 = scalar_select %p718_p10, %s1878_s15, 1  ;;  %1554 = vmatprep.subr.bf16.mxu0 %v1737_v3  ;;  %1572 = vmatprep.subr.bf16.mxu1 %v1737_v3 }
  0x22   : > { %v1490_v22 = vld [vmem:[%s2190_s7] ss:$0 sm:$0xff]  ;;  %s1528_s7 = sshll.u32 %s1878_s15, 8 }
  0x23   : > { %s1921_s4 = sshll.u32 %s1915_s29, 3  ;;  %v1498_v45 = vld [vmem:[%s2191_s8] ss:$0 sm:$0xff] }
  0x24   : > { %s721_s2 = scalar_lea.vmem %s2189_s24, %s1921_s4  ;;  %1555 = vmatpush3.bf16.msra.mxu0 %v1656_v4  ;;  %1573 = vmatpush3.bf16.msra.mxu1 %v1663_v37  ;;  %v1499_v47 = vld [vmem:[%s2192_s9] ss:$0 sm:$0xff]  ;;  %s2194_s24 = smov 64  }
  0x25   : > { %v1930_v7 = vld [vmem:[%s721_s2] sm:$0xff]  ;;  %1556 = vmatprep.subr.bf16.mxu0 %v1737_v3  ;;  %1574 = vmatprep.subr.bf16.mxu1 %v1737_v3  ;;  %s2196_s9 = sld [smem:[#allocation11_spill]]  ;;  %s2197_s2 = sld [smem:[#allocation9_spill]] }
  0x26   : > { %761 = vrot.lane.b32.xlu0 %v1930_v7, %s2170_s3  ;;  %v754_v9 = vrot.slane %v1930_v7, 1  ;;  %v746_v15 = vrot.slane %v1930_v7, 7 }
  0x28   : > { %v759_v10 = vsel %vm757_vm0, %v754_v9, 0.0  ;;  %1557 = vmatpush3.bf16.msra.mxu0 %v1657_v8  ;;  %v753_v17 = vsel %vm750_vm2, %v746_v15, 0.0  ;;  %1575 = vmatpush3.bf16.msra.mxu1 %v1664_v38 }
  0x29   : > { %1558 = vmatprep.subr.bf16.mxu0 %v1737_v3  ;;  %1576 = vmatprep.subr.bf16.mxu1 %v1737_v3 }
  0x2a   : > { %765 = vrot.lane.b32.xlu0 %v759_v10, %s2172_s1  ;;  %s2195_s1 = sld [smem:[#allocation10_spill]] }
  0x2b   : > { %s733_s3 = scalar_lea.vmem %s2196_s9, %s1921_s4  ;;  %s725_s25 = scalar_lea.vmem %s2197_s2, %s1921_s4 }
  0x2c   : > { %1559 = vmatpush3.bf16.msra.mxu0 %v1658_v11  ;;  %1577 = vmatpush3.bf16.msra.mxu1 %v1665_v39  ;;  %v1667_v11 = vld [vmem:[%s2161_s14] sm:$0xff]   ;;  %s2198_s9 = sld [smem:[#allocation12_spill]]  ;;  %s1741_s2 = smov [#allocation3]  }
  0x2d   : > { %1560 = vmatprep.subr.bf16.mxu0 %v1737_v3  ;;  %1578 = vmatprep.subr.bf16.mxu1 %v1737_v3  ;;  %v1113_v38 = vld [vmem:[%s725_s25] sm:$0xff]  ;;  %s1677_s25 = sshll.u32 %s1741_s2, 4  ;;  %s1678_s25 = int_to_ptr.vmem [resolvable:$false] %s1677_s25 }
  0x2e   : > { %v1510_v39 = vld [vmem:[#allocation2] ss:$0 sm:$0xff]  ;;  %vm1114_vm8 = vcmp.gt.f32.partialorder %v1113_v38, 0.0 }
  0x30   : > { %1561 = vmatpush3.bf16.msra.mxu0 %v1659_v12  ;;  %1579 = vmatpush3.bf16.msra.mxu1 %v1666_v43  ;;  %v1668_v12 = vld [vmem:[%s2161_s14 + $0x8] sm:$0xff]   ;;  %s729_s8 = scalar_lea.vmem %s2195_s1, %s1921_s4  ;;  %s739_s1 = scalar_lea.vmem %s2199_s6, %s1915_s29 }
  0x31   : > { %1562 = vmatprep.subr.bf16.mxu0 %v1737_v3  ;;  %1592 = vmatprep.subr.bf16.mxu1 %v1737_v3  ;;  %v1118_v15 = vld [vmem:[%s729_s8] sm:$0xff]  ;;  %s1679_s6 = scalar_lea.vmem %s1678_s25, 512 }
  0x32   : > { %s736_s5 = scalar_lea.vmem %s2198_s9, %s1915_s29  ;;  %s715_s29 = sand.u32 1, %s1727_s27  }
  0x33   : > { %s2102_s9 = scalar_lea.hbm %s2168_s21, %s1528_s7 }
  0x34   : > { %1563 = vmatpush3.bf16.msra.mxu0 %v1660_v13  ;;  %v1120_v13 = vld [vmem:[%s2163_s16] sm:$0x1] }
  0x35   : > { %1584 = vmatprep.subr.bf16.mxu0 %v1737_v3  ;;  %v1134_v14 = vsel %vm1132_vm6, %v1120_v13, 0 }
  0x98   : > { %v762_v16 = vpop.permute.xlu0 %761 }
  0x99   : > { %v769_v18 = vsel %vm768_vm3, %v753_v17, %v762_v16  ;;  %v1119_v16 = vpack.c.bf16 %v1118_v15, %v1118_v15 }
  0x9c   : > { %v766_v19 = vpop.permute.xlu0 %765 }
  0x9d   : > { %v771_v20 = vsel %vm770_vm4, %v769_v18, %v766_v19 }
  0x9e   : > { %v772_v21 = vpack.c.bf16 %v771_v20, %v771_v20 }
  0xa0   : > { %1565 = vmatmul.mubr.msk.bf16.vlgmr.msra.gmra.mrb[0].mxu0 %vm828_vm5, %v772_v21  ;;  %v1508_v21 = vld [vmem:[%s2159_s12] ss:$0 sm:$0xff] }
  0xa1   : > { %1588 = vmatprep.mubr.msk.bf16.mxu0 %vm1739_vm1, %v1737_v3  ;;  %1585 = vmatpush3.bf16.msra.mxu0 %v1667_v11 }
  0xa2   : > { %1586 = vmatprep.subr.bf16.mxu0 %v1737_v3 }
  0xa5   : > { %1587 = vmatpush3.bf16.msra.mxu0 %v1668_v12 }
  0xa6   : > { %1598 = vmatprep.subr.bf16.mxu0 %v1737_v3 }
 0x173   : > { %v866_v23 = vpop.f32.mrb[0].mxu0 }
 0x174   : > { %v867_v24 = vadd.f32 %v1490_v22, %v866_v23  ;;  %v1566_v25 = vpop.f32.mrb[1].mxu0  ;;  %v1509_v23 = vld [vmem:[%s2160_s13] ss:$0 sm:$0xff] }
 0x175   : > { %v869_v26 = vpop.f32.mrb[2].mxu0  ;;  %v1178_v25 = vld [vmem:[%s2165_s18] sm:$0x1] }
 0x176   : > { %v872_v27 = vmax.f32 %v867_v24, 0.0  ;;  %v1567_v28 = vpop.f32.mrb[3].mxu0 }
 0x177   : > { %v1190_v28 = vsel %vm1132_vm6, %v1178_v25, 0 }
 0x178   : > { %v873_v29 = vsel %vm768_vm3, %v872_v27, 0.0 }
 0x179   : > { %874 = vadd.xlane.f32.xlu1 %v873_v29  ;;  %v1176_v29 = vld [vmem:[%s733_s3] sm:$0xff]  ;;  %s743_s3 = scalar_lea.vmem %s2167_s20, %s1921_s4 }
 0x206   : > { %v875_v30 = vpop.xlane.xlu1 %874 }
 0x207   : > { %v877_v31 = vmul.f32 0.03125, %v875_v30  ;;  %v1177_v30 = vpack.c.bf16 %v1176_v29, %v1176_v29 }
 0x209   : > { %v878_v32 = vsub.f32 %v872_v27, %v877_v31  ;;  %v1514_v31 = vld [vmem:[%s2164_s17] ss:$0 sm:$0xff] }
 0x20b   : > { %v879_v33 = vmul.f32 %v878_v32, %v878_v32 }
 0x20d   : > { %v880_v34 = vsel %vm768_vm3, %v879_v33, 0.0 }
 0x20e   : > { %881 = vadd.xlane.f32.xlu1 %v880_v34 }
 0x29b   : > { %v882_v40 = vpop.xlane.xlu1 %881 }
 0x29c   : > { %v883_v41 = vmul.f32 0.03125, %v882_v40 }
 0x29e   : > { %v884_v42 = vadd.f32 1e-05, %v883_v41 }
 0x2a0   : > { %1669 = vrsqrt.f32 %v884_v42 }
 0x2aa   : > { %v1670_v44 = vpop.eup %1669 }
 0x2ab   : > { %v886_v46 = vmul.f32 %v1670_v44, %v878_v32 }
 0x2ad   : > { %v894_v48 = vmul.f32 %v1498_v45, %v886_v46  ;;  %v1516_v46 = vld [vmem:[%s2166_s19] ss:$0 sm:$0xff] }
 0x2af   : > { %v902_v49 = vadd.f32 %v1499_v47, %v894_v48 }
 0x2b1   : > { %908 = vrot.lane.b32.xlu0 %v902_v49, %s2193_s30  ;;  %v905_v50 = vrot.slane %v902_v49, 1  ;;  %v903_v52 = vrot.slane %v902_v49, 7 }
 0x2b3   : > { %v906_v51 = vsel %vm757_vm0, %v905_v50, 0.0  ;;  %v904_v54 = vsel %vm750_vm2, %v903_v52, 0.0  ;;  %vm1272_vm0 = vcmask 1043456  }
 0x2b4   : > { %912 = vrot.lane.b32.xlu1 %v906_v51, %s2194_s24 }
 0x323   : > { %v909_v53 = vpop.permute.xlu0 %908 }
 0x324   : > { %v915_v55 = vsel %vm768_vm3, %v904_v54, %v909_v53  ;;  %v1245_v53 = vadd.s32 8, %v1917_v5  ;;  %v1518_v54 = vld [vmem:[%s736_s5] ss:$0 sm:$0xff]  ;;  %s2106_s5 = scalar_lea.sflag [#allocation4], %s715_s29 }
 0x325   : > { %vm1251_vm10 = vcmp.ge.s32.totalorder %v1917_v5, %v1518_v54 }
 0x326   : > { %v913_v56 = vpop.permute.xlu1 %912  ;;  %vm1252_vm12 = vcmp.ge.s32.totalorder %v1245_v53, %v1518_v54 }
 0x327   : > { %v916_v57 = vsel %vm770_vm4, %v915_v55, %v913_v56  ;;  %v1519_v55 = vld [vmem:[%s739_s1] ss:$0 sm:$0xff] }
 0x328   : > { %v917_v58 = vpack.c.bf16 %v916_v57, %v916_v57  ;;  %vm1258_vm11 = vcmp.lt.s32.totalorder %v1917_v5, %v1519_v55  ;;  %vm1259_vm13 = vcmp.lt.s32.totalorder %v1245_v53, %v1519_v55 }
 0x329   : > { %vm1260_vm14 = vmand %vm1251_vm10, %vm1258_vm11 }
 0x32a   : > { %1581 = vmatmul.mubr.msk.bf16.vlgmr.msra.gmra.mrb[0].mxu1 %vm828_vm5, %v917_v58  ;;  %vm1261_vm15 = vmand %vm1252_vm12, %vm1259_vm13 }
 0x32b   : > { %1594 = vmatprep.mubr.msk.bf16.mxu1 %vm1739_vm1, %v1737_v3  ;;  %1593 = vmatpush3.bf16.msra.mxu1 %v1134_v14 }
 0x32c   : > { %1604 = vmatprep.subr.bf16.mxu1 %v1737_v3 }
 0x332   : > { %1595 = vmatmul.mubr.msk.bf16.vlgmr.msra.gmra.mrb[4].mxu1 %vm1128_vm7, %v1119_v16 }
 0x333   : > { %1606 = vmatprep.mubr.msk.bf16.mxu1 %vm1739_vm1, %v1737_v3 }
 0x3fd   : > { %v1010_v60 = vpop.f32.mrb[0].mxu1 }
 0x3fe   : > { %v1011_v61 = vadd.f32 %v1500_v59, %v1010_v60  ;;  %v1582_v62 = vpop.f32.mrb[1].mxu1  ;;  %v1520_v60 = vsel %vm1260_vm14, 1.0, %v1737_v3 }
 0x3ff   : > { %v1013_v63 = vpop.f32.mrb[2].mxu1 }
 0x400   : > { %v1016_v0 = vmax.f32 %v1011_v61, 0.0  ;;  %v1583_v1 = vpop.f32.mrb[3].mxu1  ;;  %v1521_v61 = vsel %vm1261_vm15, 1.0, %v1737_v3 }
 0x401   : > { %v1266_v63 = vpack.c.bf16 %v1521_v61, %v1520_v60 }
 0x402   : > { %v1017_v2 = vsel %vm768_vm3, %v1016_v0, 0.0 }
 0x403   : > { %1018 = vadd.xlane.f32.xlu0 %v1017_v2 }
 0x405   : > { %v1170_v32 = vpop.f32.mrb[4].mxu1 }
 0x406   : > { %v1171_v33 = vadd.f32 %v1514_v31, %v1170_v32  ;;  %v1596_v34 = vpop.f32.mrb[5].mxu1 }
 0x407   : > { %v1173_v35 = vpop.f32.mrb[6].mxu1 }
 0x408   : > { %v1233_v36 = vadd.f32 %v1171_v33, %v1930_v7  ;;  %v1597_v37 = vpop.f32.mrb[7].mxu1 }
 0x419   : > { %1236 = vrot.lane.b32.xlu0 %v1233_v36, %s2193_s30 }
 0x490   : > { %v1019_v4 = vpop.xlane.xlu0 %1018 }
 0x491   : > { %v1020_v6 = vmul.f32 0.03125, %v1019_v4 }
 0x493   : > { %v1021_v8 = vsub.f32 %v1016_v0, %v1020_v6 }
 0x494   : > { %v1237_v56 = vpop.permute.xlu0 %1236 }
 0x495   : > { %v1022_v9 = vmul.f32 %v1021_v8, %v1021_v8  ;;  %v1243_v57 = vsel %vm768_vm3, %v1930_v7, %v1237_v56 }
 0x497   : > { %v1023_v10 = vsel %vm768_vm3, %v1022_v9, 0.0 }
 0x498   : > { %1024 = vadd.xlane.f32.xlu1 %v1023_v10 }
 0x525   : > { %v1025_v17 = vpop.xlane.xlu1 %1024 }
 0x526   : > { %v1026_v18 = vmul.f32 0.03125, %v1025_v17 }
 0x528   : > { %v1027_v19 = vadd.f32 1e-05, %v1026_v18 }
 0x52a   : > { %1671 = vrsqrt.f32 %v1027_v19 }
 0x534   : > { %v1672_v20 = vpop.eup %1671 }
 0x535   : > { %v1029_v22 = vmul.f32 %v1672_v20, %v1021_v8 }
 0x537   : > { %v1037_v24 = vmul.f32 %v1508_v21, %v1029_v22 }
 0x539   : > { %v1045_v26 = vadd.f32 %v1509_v23, %v1037_v24 }
 0x53b   : > { %v1046_v27 = vpack.c.bf16 %v1045_v26, %v1045_v26 }
 0x53d   : > { %1589 = vmatmul.mubr.msk.bf16.vlgmr.msra.gmra.mrb[4].mxu0 %vm768_vm3, %v1046_v27 }
 0x53e   : > { %1599 = vmatpush3.bf16.msra.mxu0 %v1190_v28  ;;  %1600 = vmatprep.mubr.msk.bf16.mxu0 %vm1739_vm1, %v1737_v3  ;;  %vm1268_vm1 = vcmask 64512  }
 0x545   : > { %1601 = vmatmul.mubr.msk.bf16.vlgmr.msra.gmra.mrb[8].mxu0 %vm1128_vm7, %v1177_v30 }
 0x610   : > { %v1107_v40 = vpop.f32.mrb[4].mxu0 }
 0x611   : > { %v1108_v41 = vadd.f32 %v1510_v39, %v1107_v40  ;;  %v1590_v42 = vpop.f32.mrb[5].mxu0 }
 0x612   : > { %v1110_v43 = vpop.f32.mrb[6].mxu0 }
 0x613   : > { %v1115_v44 = vsel %vm1114_vm8, 0.0, %v1108_v41  ;;  %v1591_v45 = vpop.f32.mrb[7].mxu0 }
 0x614   : > { %1117 = vst.msk [vmem:[%s743_s3] sm:$0xff] %vm1116_vm9, %v1115_v44 }
 0x618   : > { %v1226_v47 = vpop.f32.mrb[8].mxu0 }
 0x619   : > { %v1227_v48 = vadd.f32 %v1516_v46, %v1226_v47  ;;  %v1602_v49 = vpop.f32.mrb[9].mxu0 }
 0x61a   : > { %v1229_v50 = vpop.f32.mrb[10].mxu0 }
 0x61b   : > { %v1234_v51 = vadd.f32 %v1227_v48, %v1930_v7  ;;  %v1603_v52 = vpop.f32.mrb[11].mxu0 }
 0x61d   : > { %1240 = vrot.lane.b32.xlu1 %v1234_v51, %s2194_s24  ;;  %s1484_s24 = sshll.u32 %s715_s29, 4 }
 0x61e   : > { %s717_s3 = scalar_lea.vmem [#allocation3], %s1484_s24 }
 0x61f   : > { %s1340_s30 = sshll.u32 %s717_s3, 4  ;;  %s2097_s30 = int_to_ptr.vmem [resolvable:$true] %s1340_s30 }
 0x620   : > { %s1673_s15 = scalar_lea.vmem %s2097_s30, 256  ;;  %p1680_p0 = scmp.lt.s32.totalorder %s2097_s30, %s1678_s25 }
 0x621   : > { %p1674_p11 = scmp.ne.s32.totalorder %s2097_s30, %s1673_s15  ;;  %p1681_p1 = scmp.lt.s32.totalorder %s1679_s6, %s1673_s15 }
 0x623   : > { %p1675_p12 = pnand %p1674_p11, %p1895_p5  ;;  %p1682_p2 = por %p1681_p1, %p1680_p0 }
 0x625   : > { %p1676_p13 = pneg %p1675_p12 }
 0x627   : > { %p1683_p3 = pnand %p1682_p2, %p1676_p13 }
 0x68f   : > { %v1241_v58 = vpop.permute.xlu1 %1240 }
 0x690   : > { %v1244_v59 = vsel %vm770_vm4, %v1243_v57, %v1241_v58 }
 0x691   : > { %v1267_v62 = vpack.c.bf16 %v1244_v59, %v1244_v59 }
 0x693   : > { %v1274_v5 = vsel %vm1272_vm0, %v1267_v62, 0 }
 0x694   : > { %1605 = vmatpush3.bf16.msra.mxu1 %v1274_v5 }
 0x697   : > { %1607 = vmatmul.mubr.msk.bf16.vlgmr.msra.gmra.mrb[8].mxu1 %vm1268_vm1, %v1266_v63 }
 0x76a   : > { %v1310_v7 = vpop.f32.mrb[8].mxu1 }
 0x76b   : > { %1317 = vst.msk [vmem:[%s717_s3] sm:$0xff] %vm828_vm5, %v1310_v7  ;;  %v1608_v3 = vpop.f32.mrb[9].mxu1 }
 0x76c   : > { %v1313_v0 = vpop.f32.mrb[10].mxu1 }
 0x76d   : > { %1318 = vst.msk [vmem:[%s717_s3 + $0x8] sm:$0xff] %vm828_vm5, %v1313_v0  ;;  %v1609_v1 = vpop.f32.mrb[11].mxu1 }
 0x76e   : > { %1686 = shalt.err (!%p1683_p3)
}
 0x76f   : > { %s1687_s1 = scalar_lea.hbm %s2102_s9, 256  ;;  %s1691_s3 = scalar_lea.hbm %s2168_s21, 512 }
 0x770   : > { %p1688_p4 = scmp.ne.s32.totalorder %s2102_s9, %s1687_s1  ;;  %p1692_p9 = scmp.lt.u32.totalorder %s2102_s9, %s2168_s21 }
 0x771   : > { %p1693_p10 = scmp.lt.u32.totalorder %s1691_s3, %s1687_s1  ;;  %p1695_p12 = scmp.lt.u32.totalorder %s1687_s1, %s2102_s9 }
 0x772   : > { %p1689_p7 = pnand %p1688_p4, %p1895_p5 }
 0x773   : > { %p1694_p11 = por %p1693_p10, %p1692_p9 }
 0x774   : > { %p1690_p8 = pneg %p1689_p7 }
 0x775   : > { %p1696_p13 = por %p1695_p12, %p1694_p11 }
 0x777   : > { %p1697_p0 = pnand %p1696_p13, %p1690_p8 }
 0x779   : > { %1700 = shalt.err (!%p1697_p0)
}
 0x77a   : > { %s1742_s8 = smov 128   ;;  %s1743_s15 = smov 8  }
 0x77b   : > { %1610 = dma.vmem_to_hbm [thread:$0]  (%p1895_p5), %s2097_s30, 256, %s2102_s9, %s2106_s5, %s1742_s8, %s1742_s8, %s1743_s15  }
 0x77c PF: > { %p1616_p1 = scmp.ge.s32.totalorder %s1735_s28, 2  ;;  %s1362_s2 = sand.u32 1, %s1723_s26  }
 0x77d   : > { %s1363_s25 = scalar_lea.sflag [#allocation4], %s1362_s2 }
 0x77e   : > { %p1613_p2 = pnand %p1616_p1, %p1899_p6 }
 0x780   : > { %1718 = dma.done.wait (!%p1613_p2), %s1363_s25, 256  }
 0x781   : > { %1720 = vsyncadd (!%p1613_p2), %s1363_s25, 4294967040  ;;  %s2200_s6 = sld [smem:[#allocation6_spill]]  ;;  %s2201_s3 = sld [smem:[#allocation7_spill]] }
 0x782   : > { %p34_p3 = scmp.ge.s32.totalorder %s1882_s0, 4   ;;  %s2202_s26 = smov %s1727_s27 }
 0x783   : > { %s2204_s28 = smov %s1882_s0 }
 0x784   :  { %36 = sbr.rel (!%p34_p3) target bundleno = 14 (0xe), region = 162 }
 0x787   : > { %s2203_s27 = smov %s2200_s6 }
 0x78b   :  { %1368 = vsyncpa [#allocation4], 1 }
 0x78c   :  { %1370 = vsyncpa [#allocation4 + $0x1], 1 }

</bundles_post_ra>
